<compile_context>
chip_gen: v6e
topology: v6e:2x2x1
jax: 0.10.0
libtpu: 0.0.40
codegen_flags: <defaults>
</compile_context>

<pallas_src>
import functools

import jax
import jax.numpy as jnp
from jax.experimental import pallas as pl
from jax.experimental.pallas import tpu as pltpu

_VMEM = pl.BlockSpec(memory_space=pltpu.MemorySpace.VMEM)
_NEG_SLOPE = 0.2


def _recip(d):
    """EUP approximate reciprocal + one Newton step (~f32 accurate)."""
    r = pl.reciprocal(d, approx=True)
    return r * (2.0 - d * r)


# ----------------------------- Pallas kernel ------------------------------- #

def _model_kernel(x_ref, gslab_ref, crow_ref, cmat_ref, out_ref, *,
                  n, heads, out_ch, g):
    f32 = jnp.float32
    hn = heads * n            # lane-dense logit width (128 here)
    hc = heads * out_ch       # concatenated feature width (64 here)

    x = x_ref[...].astype(f32)                              # [n, 1]

    # Packed graph slab: rows 0:n = additive edge mask (0 / -1e30, head-tiled),
    # rows n:n+g = mean-pool matrix (lanes 0:n).
    adjb1 = gslab_ref[0:n, :]                                # [n, hn]
    pool = gslab_ref[n:n + g, 0:n]                           # [g, n]

    # Packed row constants (all lane offsets 0).
    d1exp = crow_ref[0:1, :]                                 # [1, hn]
    s1exp = crow_ref[1:2, :]                                 # [1, hn]
    w1row = crow_ref[2:3, 0:hc]                              # [1, hc]
    b1row = crow_ref[3:4, 0:hc]                              # [1, hc]
    b2row = crow_ref[4:5, 0:out_ch]                          # [1, out_ch]
    wlinrow = crow_ref[5:6, 0:out_ch]                        # [1, out_ch]
    blin = crow_ref[6:7, 0:1]                                # [1, 1]

    # Packed matrix constants (sublane offsets multiples of 8, lane offset 0).
    diagp = cmat_ref[0:n, :]                                 # [n, hn] (eye tiled)
    bm = cmat_ref[n:n + hn, 0:hc]                            # [hn, hc] block mask
    w2cat = cmat_ref[n + hn:n + hn + hc, 0:out_ch + 2]       # [hc, out_ch+2]

    # ---------------- GATConv 1 (1 -> out_ch, `heads` heads, concat) --------
    # xrow[hd*n + j] = x[j]  (x replicated along lanes, one VPU mul + XLU sum)
    xrow = jnp.sum(x * diagp, axis=0, keepdims=True)         # [1, hn]
    # Logits e[i, hd*n+j] = x[i]*d1[hd] + x[j]*s1[hd]   (pure VPU)
    e = x * d1exp + xrow * s1exp                             # [n, hn]
    e = jnp.where(e >= 0, e, _NEG_SLOPE * e)                 # LeakyReLU
    e = e + adjb1                                            # mask non-edges
    # Row max over all heads is softmax-invariant per head block; masked
    # entries underflow to exact 0.  (Safe at these weight scales; den clamp
    # below turns a hypothetical whole-head underflow into 0, not NaN.)
    p = jnp.exp(e - jnp.max(e, axis=-1, keepdims=True))      # [n, hn]

    # One block-diagonal matmul for numerator AND denominator:
    #   rows 0:n   : (p * xrow) @ bm  ->  num / w1_row
    #   rows n:2n  :  p         @ bm  ->  den
    p2cat = jnp.concatenate([p * xrow, p], axis=0)           # [2n, hn]
    pd = jnp.dot(p2cat, bm, preferred_element_type=f32)      # [2n, hc]
    num1 = pd[0:n, :]
    den1 = jnp.maximum(pd[n:2 * n, :], 1e-30)
    x1 = jnp.maximum(num1 * _recip(den1) * w1row + b1row, 0.0)   # [n, hc]

    # ---------------- GATConv 2 (hc -> out_ch, 1 head, mean) ----------------
    # Single projection matmul produces h2 and both attention terms.
    h2cat = jnp.dot(x1, w2cat, preferred_element_type=f32)   # [n, out_ch+2]
    h2 = h2cat[:, 0:out_ch]                                  # [n, out_ch]
    a_s2 = h2cat[:, out_ch:out_ch + 1]                       # [n, 1]
    a_d2 = h2cat[:, out_ch + 1:out_ch + 2]                   # [n, 1]
    eye_n = diagp[:, 0:n]                                    # [n, n]
    a_s2row = jnp.sum(a_s2 * eye_n, axis=0, keepdims=True)   # [1, n]

    e2 = a_d2 + a_s2row                                      # [n, n]
    e2 = jnp.where(e2 >= 0, e2, _NEG_SLOPE * e2)
    e2 = e2 + adjb1[:, 0:n]                                  # layer-2 mask = head-0 block
    p2 = jnp.exp(e2 - jnp.max(e2, axis=-1, keepdims=True))   # [n, n]
    num2 = jnp.dot(p2, h2, preferred_element_type=f32)       # [n, out_ch]
    den2 = jnp.sum(p2, axis=-1, keepdims=True)               # [n, 1] (>= 1)
    x2 = jnp.maximum(num2 * _recip(den2) + b2row, 0.0)       # [n, out_ch]

    # ---------------- Linear (lane reduce) + global mean pool ---------------
    t = jnp.sum(x2 * wlinrow, axis=-1, keepdims=True)        # [n, 1]
    y = jnp.dot(pool, t, preferred_element_type=f32) + blin  # [g, 1]
    out_ref[...] = y.astype(out_ref.dtype)


# --------------------------- One-time preparation --------------------------- #

def prepare_params(params, *, n, heads, out_ch):
    """Constant-fold weights / masks into two lane-dense VMEM slabs (run once)."""
    f32 = jnp.float32
    hn, hc = heads * n, heads * out_ch

    w1 = params["w1"].astype(f32)                                   # [1, hc]
    w1h = w1.reshape(heads, out_ch)
    s1 = jnp.sum(w1h * params["att_src1"].astype(f32), axis=-1)     # [heads]
    d1 = jnp.sum(w1h * params["att_dst1"].astype(f32), axis=-1)     # [heads]
    head_of_col = jnp.arange(hn) // n

    crow = jnp.zeros((8, hn), f32)
    crow = crow.at[0, :].set(d1[head_of_col])
    crow = crow.at[1, :].set(s1[head_of_col])
    crow = crow.at[2, :hc].set(w1[0])
    crow = crow.at[3, :hc].set(params["b1"].astype(f32))
    crow = crow.at[4, :out_ch].set(params["b2"].astype(f32))
    crow = crow.at[5, :out_ch].set(params["w_lin"].astype(f32)[:, 0])
    crow = crow.at[6, 0].set(params["b_lin"].astype(f32)[0])

    cols = jnp.arange(hn)
    diagplain = (cols[None, :] % n == jnp.arange(n)[:, None]).astype(f32)   # [n, hn]
    bm = (jnp.arange(hn)[:, None] // n ==
          jnp.arange(hc)[None, :] // out_ch).astype(f32)                    # [hn, hc]
    w2 = params["w2"].astype(f32)                                           # [hc, out_ch]
    w2cat = jnp.concatenate(
        [w2,
         w2 @ params["att_src2"].astype(f32).T,
         w2 @ params["att_dst2"].astype(f32).T], axis=1)                    # [hc, out_ch+2]

    cmat = jnp.zeros((n + hn + hc, hn), f32)
    cmat = cmat.at[:n, :].set(diagplain)
    cmat = cmat.at[n:n + hn, :hc].set(bm)
    cmat = cmat.at[n + hn:, :out_ch + 2].set(w2cat)
    return crow, cmat


def prepare_graph(adj, pool_mat, *, heads):
    """Pack additive edge mask (head-tiled) + pool matrix into one slab (run once)."""
    f32 = jnp.float32
    n = adj.shape[0]
    g = pool_mat.shape[0]
    adj_bias = jnp.where(adj > 0, 0.0, -1e30).astype(f32)           # [n, n]
    adjb1 = jnp.tile(adj_bias, (1, heads))                          # [n, heads*n]
    rows = ((n + g + 7) // 8) * 8
    gslab = jnp.zeros((rows, heads * n), f32)
    gslab = gslab.at[:n, :].set(adjb1)
    gslab = gslab.at[n:n + g, :n].set(pool_mat.astype(f32))
    return gslab


# ------------------------------- Forward wrapper ---------------------------- #

@functools.partial(jax.jit, static_argnames=("n", "heads", "out_ch", "g"))
def model_forward(x, gslab, crow, cmat, *, n, heads, out_ch, g):
    kernel = functools.partial(_model_kernel, n=n, heads=heads,
                               out_ch=out_ch, g=g)
    return pl.pallas_call(
        kernel,
        out_shape=jax.ShapeDtypeStruct((g, 1), jnp.float32),
        in_specs=[_VMEM] * 4,
        out_specs=_VMEM,
    )(x.astype(jnp.float32), gslab, crow, cmat)


# --------------------------- Pure-JAX reference ----------------------------- #

def _gat_ref(x, w, att_src, att_dst, bias, adj, heads, out_ch, concat, relu):
    h = x @ w
    outs = []
    for hd in range(heads):
        hh = h[:, hd * out_ch:(hd + 1) * out_ch]
        a_s = (hh * att_src[hd]).sum(-1)
        a_d = (hh * att_dst[hd]).sum(-1)
        e = a_d[:, None] + a_s[None, :]
        e = jnp.where(e >= 0, e, 0.2 * e)
        e = jnp.where(adj > 0, e, -1e30)
        p = jnp.exp(e - e.max(-1, keepdims=True))
        p = jnp.where(adj > 0, p, 0.0)
        alpha = p / p.sum(-1, keepdims=True)
        outs.append(alpha @ hh)
    out = jnp.concatenate(outs, -1) if concat else sum(outs) / heads
    out = out + bias
    return jnp.maximum(out, 0.0) if relu else out


def model_ref(params, x, adj, pool_mat, h_ch, heads):
    p = params
    x = _gat_ref(x, p["w1"], p["att_src1"], p["att_dst1"], p["b1"], adj,
                 heads, h_ch, True, True)
    x = _gat_ref(x, p["w2"], p["att_src2"], p["att_dst2"], p["b2"], adj,
                 1, h_ch, False, True)
    return pool_mat @ x @ p["w_lin"] + p["b_lin"]


# --------------------------------- Main ------------------------------------ #

if __name__ == "__main__":
    key = jax.random.PRNGKey(0)
    ks = jax.random.split(key, 12)

    # Module config: h_channels=[8], heads=8, in_channels=1.
    N = 16          # total nodes (two graphs of 8 nodes each)
    F_IN = 1
    H_CH = 8
    HEADS = 8

    def init(k, shape, scale=0.3):
        return (scale * jax.random.normal(k, shape)).astype(jnp.float32)

    params = {
        # gat1: in=1 -> out=8, heads=8, concat=True
        "w1": init(ks[0], (F_IN, HEADS * H_CH)),          # lin weight (transposed)
        "att_src1": init(ks[1], (HEADS, H_CH)),
        "att_dst1": init(ks[2], (HEADS, H_CH)),
        "b1": init(ks[3], (HEADS * H_CH,)),
        # gat2: in=64 -> out=8, heads=1, concat=False
        "w2": init(ks[4], (HEADS * H_CH, 1 * H_CH)),
        "att_src2": init(ks[5], (1, H_CH)),
        "att_dst2": init(ks[6], (1, H_CH)),
        "b2": init(ks[7], (H_CH,)),
        # lin: 8 -> 1
        "w_lin": init(ks[8], (H_CH, 1)),
        "b_lin": init(ks[9], (1,)),
    }

    # Node features x: [N, 1]
    x = jax.random.normal(ks[10], (N, F_IN)).astype(jnp.float32)

    # edge_index: bidirectional ring within each of the two 8-node graphs
    # (PyG convention: row 0 = source, row 1 = target; no self loops).
    src, dst = [], []
    for off in (0, 8):
        for i in range(8):
            j = (i + 1) % 8
            src += [off + i, off + j]
            dst += [off + j, off + i]
    edge_index = jnp.array([src, dst], dtype=jnp.int32)   # [2, E]
    batch = jnp.array([0] * 8 + [1] * 8, dtype=jnp.int32)

    # Dense adjacency mask adj[i, j] = 1 iff edge j -> i, plus self loops
    # (matches GATConv's add_self_loops for simple graphs).
    adj = jnp.zeros((N, N), jnp.float32)
    adj = adj.at[edge_index[1], edge_index[0]].set(1.0)
    adj = adj.at[jnp.arange(N), jnp.arange(N)].set(1.0)

    # Mean-pool matrix P[g, n] = 1/|graph g| if batch[n] == g else 0.
    G = int(batch.max()) + 1
    onehot = (batch[None, :] == jnp.arange(G)[:, None]).astype(jnp.float32)
    pool_mat = onehot / jnp.sum(onehot, axis=1, keepdims=True)

    # One-time preparation (hoisted out of the per-call forward path).
    crow, cmat = prepare_params(params, n=N, heads=HEADS, out_ch=H_CH)
    gslab = prepare_graph(adj, pool_mat, heads=HEADS)

    out = model_forward(x, gslab, crow, cmat, n=N, heads=HEADS, out_ch=H_CH, g=G)
    out = jax.block_until_ready(out)

    ref = model_ref(params, x, adj, pool_mat, H_CH, HEADS)
    assert out.shape == (G, 1), out.shape
    assert jnp.allclose(out, ref, atol=1e-3, rtol=1e-3), (out, ref)

    print("KERNEL_OK")
</pallas_src>

<mosaic_0001>
module attributes {stable_mosaic.version = 11 : i64} {
  func.func @_model_kernel(%arg0: memref<16x1xf32, #tpu.memory_space<vmem>>, %arg1: memref<24x128xf32, #tpu.memory_space<vmem>>, %arg2: memref<8x128xf32, #tpu.memory_space<vmem>>, %arg3: memref<208x128xf32, #tpu.memory_space<vmem>>, %arg4: memref<2x1xf32, #tpu.memory_space<vmem>>) attributes {dimension_semantics = [], scalar_prefetch = 0 : i64, scratch_operands = 0 : i64, tpu.core_type = #tpu.core_type<tc>} {
    %c0 = arith.constant 0 : index
    %c0_0 = arith.constant 0 : index
    %0 = vector.load %arg0[%c0, %c0_0] : memref<16x1xf32, #tpu.memory_space<vmem>>, vector<16x1xf32>
    %c0_1 = arith.constant 0 : index
    %c0_2 = arith.constant 0 : index
    %1 = vector.load %arg1[%c0_1, %c0_2] : memref<24x128xf32, #tpu.memory_space<vmem>>, vector<16x128xf32>
    %c16 = arith.constant 16 : index
    %c0_3 = arith.constant 0 : index
    %2 = vector.load %arg1[%c16, %c0_3] : memref<24x128xf32, #tpu.memory_space<vmem>>, vector<2x16xf32>
    %c0_4 = arith.constant 0 : index
    %c0_5 = arith.constant 0 : index
    %3 = vector.load %arg2[%c0_4, %c0_5] : memref<8x128xf32, #tpu.memory_space<vmem>>, vector<1x128xf32>
    %c1 = arith.constant 1 : index
    %c0_6 = arith.constant 0 : index
    %4 = vector.load %arg2[%c1, %c0_6] : memref<8x128xf32, #tpu.memory_space<vmem>>, vector<1x128xf32>
    %c2 = arith.constant 2 : index
    %c0_7 = arith.constant 0 : index
    %5 = vector.load %arg2[%c2, %c0_7] : memref<8x128xf32, #tpu.memory_space<vmem>>, vector<1x64xf32>
    %c3 = arith.constant 3 : index
    %c0_8 = arith.constant 0 : index
    %6 = vector.load %arg2[%c3, %c0_8] : memref<8x128xf32, #tpu.memory_space<vmem>>, vector<1x64xf32>
    %c4 = arith.constant 4 : index
    %c0_9 = arith.constant 0 : index
    %7 = vector.load %arg2[%c4, %c0_9] : memref<8x128xf32, #tpu.memory_space<vmem>>, vector<1x8xf32>
    %c5 = arith.constant 5 : index
    %c0_10 = arith.constant 0 : index
    %8 = vector.load %arg2[%c5, %c0_10] : memref<8x128xf32, #tpu.memory_space<vmem>>, vector<1x8xf32>
    %c6 = arith.constant 6 : index
    %c0_11 = arith.constant 0 : index
    %9 = vector.load %arg2[%c6, %c0_11] : memref<8x128xf32, #tpu.memory_space<vmem>>, vector<1x1xf32>
    %c0_12 = arith.constant 0 : index
    %c0_13 = arith.constant 0 : index
    %10 = vector.load %arg3[%c0_12, %c0_13] : memref<208x128xf32, #tpu.memory_space<vmem>>, vector<16x128xf32>
    %c16_14 = arith.constant 16 : index
    %c0_15 = arith.constant 0 : index
    %11 = vector.load %arg3[%c16_14, %c0_15] : memref<208x128xf32, #tpu.memory_space<vmem>>, vector<128x64xf32>
    %c144 = arith.constant 144 : index
    %c0_16 = arith.constant 0 : index
    %12 = vector.load %arg3[%c144, %c0_16] : memref<208x128xf32, #tpu.memory_space<vmem>>, vector<64x10xf32>
    %13 = vector.broadcast %0 : vector<16x1xf32> to vector<16x128xf32>
    %14 = arith.mulf %13, %10 : vector<16x128xf32>
    %cst = arith.constant dense<0.000000e+00> : vector<128xf32>
    %15 = vector.multi_reduction <add>, %14, %cst [0] : vector<16x128xf32> to vector<128xf32>
    %16 = vector.shape_cast %15 : vector<128xf32> to vector<1x128xf32>
    %17 = vector.broadcast %0 : vector<16x1xf32> to vector<16x128xf32>
    %18 = vector.broadcast %3 : vector<1x128xf32> to vector<16x128xf32>
    %19 = arith.mulf %17, %18 : vector<16x128xf32>
    %20 = arith.mulf %16, %4 : vector<1x128xf32>
    %21 = vector.broadcast %20 : vector<1x128xf32> to vector<16x128xf32>
    %22 = arith.addf %19, %21 : vector<16x128xf32>
    %cst_17 = arith.constant 0.000000e+00 : f32
    %23 = vector.broadcast %cst_17 : f32 to vector<16x128xf32>
    %24 = arith.cmpf oge, %22, %23 : vector<16x128xf32>
    %cst_18 = arith.constant 2.000000e-01 : f32
    %25 = vector.broadcast %cst_18 : f32 to vector<16x128xf32>
    %26 = arith.mulf %25, %22 : vector<16x128xf32>
    %27 = arith.select %24, %22, %26 : vector<16x128xi1>, vector<16x128xf32>
    %28 = arith.addf %27, %1 : vector<16x128xf32>
    %cst_19 = arith.constant dense<0xFF800000> : vector<16xf32>
    %29 = vector.multi_reduction <maximumf>, %28, %cst_19 [1] : vector<16x128xf32> to vector<16xf32>
    %30 = vector.shape_cast %29 : vector<16xf32> to vector<16x1xf32>
    %31 = vector.broadcast %30 : vector<16x1xf32> to vector<16x128xf32>
    %32 = arith.subf %28, %31 : vector<16x128xf32>
    %33 = math.exp %32 : vector<16x128xf32>
    %34 = vector.broadcast %16 : vector<1x128xf32> to vector<16x128xf32>
    %35 = arith.mulf %33, %34 : vector<16x128xf32>
    %36 = tpu.concatenate %35, %33 in 0 : vector<16x128xf32>, vector<16x128xf32> -> vector<32x128xf32>
    %cst_20 = arith.constant dense<0.000000e+00> : vector<32x64xf32>
    %37 = tpu.matmul %36, %11, %cst_20 {dimension_numbers = #tpu.dot_dimension_numbers<[1], [0], [0], [1], [0, 0, 1, 1], [], []>} : vector<32x128xf32>, vector<128x64xf32>, vector<32x64xf32> -> vector<32x64xf32>
    %38 = vector.extract_strided_slice %37 {offsets = [0, 0], sizes = [16, 64], strides = [1, 1]} : vector<32x64xf32> to vector<16x64xf32>
    %39 = vector.extract_strided_slice %37 {offsets = [16, 0], sizes = [16, 64], strides = [1, 1]} : vector<32x64xf32> to vector<16x64xf32>
    %cst_21 = arith.constant 1.000000e-30 : f32
    %40 = vector.broadcast %cst_21 : f32 to vector<16x64xf32>
    %41 = arith.maximumf %39, %40 : vector<16x64xf32>
    %42 = tpu.reciprocal %41 {approx = true} : vector<16x64xf32> -> vector<16x64xf32>
    %43 = arith.mulf %41, %42 : vector<16x64xf32>
    %cst_22 = arith.constant 2.000000e+00 : f32
    %44 = vector.broadcast %cst_22 : f32 to vector<16x64xf32>
    %45 = arith.subf %44, %43 : vector<16x64xf32>
    %46 = arith.mulf %42, %45 : vector<16x64xf32>
    %47 = arith.mulf %38, %46 : vector<16x64xf32>
    %48 = vector.broadcast %5 : vector<1x64xf32> to vector<16x64xf32>
    %49 = arith.mulf %47, %48 : vector<16x64xf32>
    %50 = vector.broadcast %6 : vector<1x64xf32> to vector<16x64xf32>
    %51 = arith.addf %49, %50 : vector<16x64xf32>
    %cst_23 = arith.constant 0.000000e+00 : f32
    %52 = vector.broadcast %cst_23 : f32 to vector<16x64xf32>
    %53 = arith.maximumf %51, %52 : vector<16x64xf32>
    %cst_24 = arith.constant dense<0.000000e+00> : vector<16x10xf32>
    %54 = tpu.matmul %53, %12, %cst_24 {dimension_numbers = #tpu.dot_dimension_numbers<[1], [0], [0], [1], [0, 0, 1, 1], [], []>} : vector<16x64xf32>, vector<64x10xf32>, vector<16x10xf32> -> vector<16x10xf32>
    %55 = vector.extract_strided_slice %54 {offsets = [0, 0], sizes = [16, 8], strides = [1, 1]} : vector<16x10xf32> to vector<16x8xf32>
    %56 = vector.extract_strided_slice %54 {offsets = [0, 8], sizes = [16, 1], strides = [1, 1]} : vector<16x10xf32> to vector<16x1xf32>
    %57 = vector.extract_strided_slice %54 {offsets = [0, 9], sizes = [16, 1], strides = [1, 1]} : vector<16x10xf32> to vector<16x1xf32>
    %58 = vector.extract_strided_slice %10 {offsets = [0, 0], sizes = [16, 16], strides = [1, 1]} : vector<16x128xf32> to vector<16x16xf32>
    %59 = vector.broadcast %56 : vector<16x1xf32> to vector<16x16xf32>
    %60 = arith.mulf %59, %58 : vector<16x16xf32>
    %cst_25 = arith.constant dense<0.000000e+00> : vector<16xf32>
    %61 = vector.multi_reduction <add>, %60, %cst_25 [0] : vector<16x16xf32> to vector<16xf32>
    %62 = vector.shape_cast %61 : vector<16xf32> to vector<1x16xf32>
    %63 = vector.broadcast %57 : vector<16x1xf32> to vector<16x16xf32>
    %64 = vector.broadcast %62 : vector<1x16xf32> to vector<16x16xf32>
    %65 = arith.addf %63, %64 : vector<16x16xf32>
    %cst_26 = arith.constant 0.000000e+00 : f32
    %66 = vector.broadcast %cst_26 : f32 to vector<16x16xf32>
    %67 = arith.cmpf oge, %65, %66 : vector<16x16xf32>
    %cst_27 = arith.constant 2.000000e-01 : f32
    %68 = vector.broadcast %cst_27 : f32 to vector<16x16xf32>
    %69 = arith.mulf %68, %65 : vector<16x16xf32>
    %70 = arith.select %67, %65, %69 : vector<16x16xi1>, vector<16x16xf32>
    %71 = vector.extract_strided_slice %1 {offsets = [0, 0], sizes = [16, 16], strides = [1, 1]} : vector<16x128xf32> to vector<16x16xf32>
    %72 = arith.addf %70, %71 : vector<16x16xf32>
    %cst_28 = arith.constant dense<0xFF800000> : vector<16xf32>
    %73 = vector.multi_reduction <maximumf>, %72, %cst_28 [1] : vector<16x16xf32> to vector<16xf32>
    %74 = vector.shape_cast %73 : vector<16xf32> to vector<16x1xf32>
    %75 = vector.broadcast %74 : vector<16x1xf32> to vector<16x16xf32>
    %76 = arith.subf %72, %75 : vector<16x16xf32>
    %77 = math.exp %76 : vector<16x16xf32>
    %cst_29 = arith.constant dense<0.000000e+00> : vector<16x8xf32>
    %78 = tpu.matmul %77, %55, %cst_29 {dimension_numbers = #tpu.dot_dimension_numbers<[1], [0], [0], [1], [0, 0, 1, 1], [], []>} : vector<16x16xf32>, vector<16x8xf32>, vector<16x8xf32> -> vector<16x8xf32>
    %cst_30 = arith.constant dense<0.000000e+00> : vector<16xf32>
    %79 = vector.multi_reduction <add>, %77, %cst_30 [1] : vector<16x16xf32> to vector<16xf32>
    %80 = vector.shape_cast %79 : vector<16xf32> to vector<16x1xf32>
    %81 = tpu.reciprocal %80 {approx = true} : vector<16x1xf32> -> vector<16x1xf32>
    %82 = arith.mulf %80, %81 : vector<16x1xf32>
    %cst_31 = arith.constant 2.000000e+00 : f32
    %83 = vector.broadcast %cst_31 : f32 to vector<16x1xf32>
    %84 = arith.subf %83, %82 : vector<16x1xf32>
    %85 = arith.mulf %81, %84 : vector<16x1xf32>
    %86 = vector.broadcast %85 : vector<16x1xf32> to vector<16x8xf32>
    %87 = arith.mulf %78, %86 : vector<16x8xf32>
    %88 = vector.broadcast %7 : vector<1x8xf32> to vector<16x8xf32>
    %89 = arith.addf %87, %88 : vector<16x8xf32>
    %cst_32 = arith.constant 0.000000e+00 : f32
    %90 = vector.broadcast %cst_32 : f32 to vector<16x8xf32>
    %91 = arith.maximumf %89, %90 : vector<16x8xf32>
    %92 = vector.broadcast %8 : vector<1x8xf32> to vector<16x8xf32>
    %93 = arith.mulf %91, %92 : vector<16x8xf32>
    %cst_33 = arith.constant dense<0.000000e+00> : vector<16xf32>
    %94 = vector.multi_reduction <add>, %93, %cst_33 [1] : vector<16x8xf32> to vector<16xf32>
    %95 = vector.shape_cast %94 : vector<16xf32> to vector<16x1xf32>
    %cst_34 = arith.constant dense<0.000000e+00> : vector<2x1xf32>
    %96 = tpu.matmul %2, %95, %cst_34 {dimension_numbers = #tpu.dot_dimension_numbers<[1], [0], [0], [1], [0, 0, 1, 1], [], []>} : vector<2x16xf32>, vector<16x1xf32>, vector<2x1xf32> -> vector<2x1xf32>
    %97 = vector.broadcast %9 : vector<1x1xf32> to vector<2x1xf32>
    %98 = arith.addf %96, %97 : vector<2x1xf32>
    %c0_35 = arith.constant 0 : index
    %c0_36 = arith.constant 0 : index
    %99 = vector.load %arg4[%c0_35, %c0_36] : memref<2x1xf32, #tpu.memory_space<vmem>>, vector<2x1xf32>
    tpu.vector_store %arg4[%c0_35, %c0_36], %98 {strides = array<i32>} : memref<2x1xf32, #tpu.memory_space<vmem>>, vector<2x1xf32>,
    return
  }
}

</mosaic_0001>

<bundles_post_ra>
// kernel: model_forward.1
= control target key start
LH: loop header
LB: loop body
LE: loop exit
PB: predicated region body
PF: predicated region fallthrough
CT: control target
= control target key end

     0   :  { %9 = vsyncpa [#allocation3], 0  ;;  %s875_s0 = inlined_call_operand.vmem [shape: f32[16,1], index: 0, kind: input, shape index: {}]   ;;  %s876_s1 = inlined_call_operand.hbm [shape: f32[24,128], index: 1, kind: input, shape index: {}]   ;;  %s877_s2 = inlined_call_operand.vmem [shape: f32[8,128], index: 2, kind: input, shape index: {}]   ;;  %s878_s3 = inlined_call_operand.hbm [shape: f32[208,128], index: 3, kind: input, shape index: {}]   ;;  %s879_s4 = inlined_call_operand.vmem [shape: f32[2,1], index: 4, kind: output, shape index: {}]  }
   0x1   :  { %10 = vsyncpa [#allocation5], 0  ;;  %s775_s15 = smov [#allocation2]  }
   0x2   :  { %s18_s16 = sshll.u32 %s775_s15, 4  ;;  %s19_s16 = int_to_ptr.vmem [resolvable:$true] %s18_s16 }
   0x3   :  { %s739_s17 = scalar_lea.vmem %s19_s16, 384  ;;  %p744_p1 = scmp.lt.s32.totalorder %s19_s16, %s19_s16 }
   0x4   :  { %p740_p0 = scmp.ne.s32.totalorder %s19_s16, %s739_s17  ;;  %p745_p2 = scmp.lt.s32.totalorder %s739_s17, %s739_s17 }
   0x6   :  { %p746_p3 = por %p745_p2, %p744_p1 }
   0x8   :  { %p747_p4 = pnand %p746_p3, %p740_p0 }
   0xa   :  { %750 = shalt.err (!%p747_p4)
}
   0xb   :  { %s776_s18 = smov 128   ;;  %s777_s19 = smov 8  }
   0xc   :  { %24 = dma.hbm_to_vmem [thread:$0]  %s876_s1, 384, %s19_s16, [#allocation3], %s776_s18, %s776_s18, %s777_s19  }
   0xd   :  { %s778_s22 = smov [#allocation4]  }
   0xe   :  { %s32_s23 = sshll.u32 %s778_s22, 4  ;;  %s33_s23 = int_to_ptr.vmem [resolvable:$true] %s32_s23 }
   0xf   :  { %s759_s24 = scalar_lea.vmem %s33_s23, 3328  ;;  %p764_p6 = scmp.lt.s32.totalorder %s33_s23, %s33_s23 }
  0x10   :  { %p760_p5 = scmp.ne.s32.totalorder %s33_s23, %s759_s24  ;;  %p765_p7 = scmp.lt.s32.totalorder %s759_s24, %s759_s24 }
  0x12   :  { %p766_p8 = por %p765_p7, %p764_p6 }
  0x14   :  { %p767_p9 = pnand %p766_p8, %p760_p5 }
  0x16   :  { %770 = shalt.err (!%p767_p9)
}
  0x17   :  { %38 = dma.hbm_to_vmem [thread:$0]  %s878_s3, 3328, %s33_s23, [#allocation5], %s776_s18, %s776_s18, %s777_s19  }
  0x18   :  { %771 = dma.done.wait [#allocation3], 384  }
  0x19   :  { %772 = vsyncadd [#allocation3], 4294966912 }
  0x1a   :  { %773 = dma.done.wait [#allocation5], 3328  }
  0x1b   :  { %774 = vsyncadd [#allocation5], 4294963968  ;;  %v779_v0 = vmov 0   ;;  %v45_v1 = vld [vmem:[%s875_s0] sm:$0xff]  ;;  %v46_v2 = vld [vmem:[%s875_s0 + $0x8] sm:$0xff]  ;;  %v109_v15 = vlaneseq  ;;  %vm246_vm2 = vcmask 523264  }
  0x1c   :  { %711 = vset.pattern.permute.xlu0 %v779_v0  ;;  %v74_v3 = vld [vmem:[#allocation4 + $0x88] sm:$0xff]  ;;  %v73_v4 = vld [vmem:[#allocation4 + $0x80] sm:$0xff]  ;;  %v72_v5 = vld [vmem:[#allocation4 + $0x78] sm:$0xff]  ;;  %vm340_vm3 = vcmask 130048   ;;  %vm491_vm6 = vcmask 64512   ;;  %vm783_vm7 = vmmov 0  }
  0x1d   :  { %85 = vperm.xlu0 %711, %v45_v1   ;;  %631 = vmatprep.subr.mxu0 %v74_v3  ;;  %v71_v6 = vld [vmem:[#allocation4 + $0x70] sm:$0xff]  ;;  %v821_v8 = vld [vmem:[#allocation4] sm:$0xff]  ;;  %v823_v9 = vld [vmem:[#allocation4 + $0x8] sm:$0xff]  ;;  %v110_v18 = vshrl.u32 %v109_v15, 7  ;;  %vm575_vm8 = vcmask 1024  }
  0x1e   :  { %632 = vmatpush3.msra.mxu0 %v74_v3  ;;  %v51_v21 = vld [vmem:[%s877_s2 + $0x1] sm:$0x1]  ;;  %v583_v24 = vld [vmem:[%s877_s2] ss:$0 sm:$0xff]  ;;  %v839_v36 = vld [vmem:[#allocation2 + $0x8] sm:$0xff] }
  0x1f   :  { %633 = vmatprep.subr.mxu0 %v73_v4  ;;  %v111_v22 = vsub.s32 0, %v110_v18  ;;  %v836_v31 = vld [vmem:[#allocation2] sm:$0xff]  ;;  %v69_v40 = vld [vmem:[#allocation4 + $0x60] sm:$0xff]  ;;  %v68_v41 = vld [vmem:[#allocation4 + $0x58] sm:$0xff] }
  0x20   :  { %634 = vmatpush3.msra.mxu0 %v73_v4  ;;  %v70_v39 = vld [vmem:[#allocation4 + $0x68] sm:$0xff]  ;;  %v67_v42 = vld [vmem:[#allocation4 + $0x50] sm:$0xff]  ;;  %v65_v44 = vld [vmem:[#allocation4 + $0x40] sm:$0xff] }
  0x21   :  { %90 = vperm.xlu0 %711, %v46_v2   ;;  %635 = vmatprep.subr.mxu0 %v72_v5  ;;  %v66_v43 = vld [vmem:[#allocation4 + $0x48] sm:$0xff]  ;;  %v64_v45 = vld [vmem:[#allocation4 + $0x38] sm:$0xff]  ;;  %v63_v46 = vld [vmem:[#allocation4 + $0x30] sm:$0xff] }
  0x22   :  { %636 = vmatpush3.msra.mxu0 %v72_v5  ;;  %v62_v47 = vld [vmem:[#allocation4 + $0x28] sm:$0xff]  ;;  %v61_v48 = vld [vmem:[#allocation4 + $0x20] sm:$0xff]  ;;  %v60_v49 = vld [vmem:[#allocation4 + $0x18] sm:$0xff]  ;;  %v780_v5 = vmov 8  }
  0x23   :  { %637 = vmatprep.subr.mxu0 %v71_v6  ;;  %v59_v50 = vld [vmem:[#allocation4 + $0x10] sm:$0xff]  ;;  %v82_v61 = vld [vmem:[#allocation4 + $0xc8] sm:$0xff]  ;;  %v81_v62 = vld [vmem:[#allocation4 + $0xc0] sm:$0xff]  ;;  %713 = vset.pattern.permute.xlu1 %v780_v5 }
  0x24   :  { %638 = vmatpush3.msra.mxu0 %v71_v6  ;;  %669 = vmatprep.subr.mxu1 %v82_v61  ;;  %v80_v63 = vld [vmem:[#allocation4 + $0xb8] sm:$0xff]  ;;  %v79_v0 = vld [vmem:[#allocation4 + $0xb0] sm:$0xff]  ;;  %v78_v1 = vld [vmem:[#allocation4 + $0xa8] sm:$0xff] }
  0x25   :  { %639 = vmatprep.subr.mxu0 %v70_v39  ;;  %670 = vmatpush3.msra.mxu1 %v82_v61  ;;  %v77_v2 = vld [vmem:[#allocation4 + $0xa0] sm:$0xff]  ;;  %v76_v3 = vld [vmem:[#allocation4 + $0x98] sm:$0xff]  ;;  %v75_v4 = vld [vmem:[#allocation4 + $0x90] sm:$0xff] }
  0x26   :  { %640 = vmatpush3.msra.mxu0 %v70_v39  ;;  %671 = vmatprep.subr.mxu1 %v81_v62 }
  0x27   :  { %641 = vmatprep.subr.mxu0 %v69_v40  ;;  %672 = vmatpush3.msra.mxu1 %v81_v62 }
  0x28   :  { %642 = vmatpush3.msra.mxu0 %v69_v40  ;;  %673 = vmatprep.subr.mxu1 %v80_v63 }
  0x29   :  { %643 = vmatprep.subr.mxu0 %v68_v41  ;;  %674 = vmatpush3.msra.mxu1 %v80_v63 }
  0x2a   :  { %644 = vmatpush3.msra.mxu0 %v68_v41  ;;  %675 = vmatprep.subr.mxu1 %v79_v0 }
  0x2b   :  { %645 = vmatprep.subr.mxu0 %v67_v42  ;;  %676 = vmatpush3.msra.mxu1 %v79_v0 }
  0x2c   :  { %646 = vmatpush3.msra.mxu0 %v67_v42  ;;  %677 = vmatprep.subr.mxu1 %v78_v1 }
  0x2d   :  { %647 = vmatprep.subr.mxu0 %v66_v43  ;;  %678 = vmatpush3.msra.mxu1 %v78_v1 }
  0x2e   :  { %648 = vmatpush3.msra.mxu0 %v66_v43  ;;  %679 = vmatprep.subr.mxu1 %v77_v2 }
  0x2f   :  { %649 = vmatprep.subr.mxu0 %v65_v44  ;;  %680 = vmatpush3.msra.mxu1 %v77_v2 }
  0x30   :  { %650 = vmatpush3.msra.mxu0 %v65_v44  ;;  %681 = vmatprep.subr.mxu1 %v76_v3 }
  0x31   :  { %651 = vmatprep.subr.mxu0 %v64_v45  ;;  %682 = vmatpush3.msra.mxu1 %v76_v3 }
  0x32   :  { %652 = vmatpush3.msra.mxu0 %v64_v45  ;;  %683 = vmatprep.subr.mxu1 %v75_v4 }
  0x33   :  { %653 = vmatprep.subr.mxu0 %v63_v46  ;;  %684 = vmatpush3.msra.mxu1 %v75_v4  ;;  %v782_v4 = vmov 0.0  }
  0x34   :  { %654 = vmatpush3.msra.mxu0 %v63_v46  ;;  %712 = vset.pattern.permute.xlu0 %v780_v5 }
  0x35   :  { %655 = vmatprep.subr.mxu0 %v62_v47 }
  0x36   :  { %656 = vmatpush3.msra.mxu0 %v62_v47 }
  0x37   :  { %657 = vmatprep.subr.mxu0 %v61_v48 }
  0x38   :  { %658 = vmatpush3.msra.mxu0 %v61_v48 }
  0x39   :  { %659 = vmatprep.subr.mxu0 %v60_v49 }
  0x3a   :  { %660 = vmatpush3.msra.mxu0 %v60_v49 }
  0x3b   :  { %661 = vmatprep.subr.mxu0 %v59_v50 }
  0x3c   :  { %662 = vmatpush3.msra.mxu0 %v59_v50 }
  0x98   :  { %v86_v7 = vpop.permute.xlu0 %85 }
  0x99   :  { %v93_v11 = vmul.f32 %v86_v7, %v821_v8  ;;  %v106_v26 = vmul.f32 %v583_v24, %v86_v7 }
  0x9c   :  { %v91_v10 = vpop.permute.xlu0 %90 }
  0x9d   :  { %v94_v12 = vmul.f32 %v91_v10, %v823_v9  ;;  %v107_v27 = vmul.f32 %v583_v24, %v91_v10  ;;  %v585_v24 = vld [vmem:[%s877_s2 + $0x3] ss:$0 sm:$0xff] }
  0x9f   :  { %v95_v13 = vadd.f32 %v94_v12, %v93_v11 }
  0xa1   :  { %v96_v14 = vrot.slane %v95_v13, 4 }
  0xa3   :  { %v97_v16 = vadd.f32 %v96_v14, %v95_v13 }
  0xa5   :  { %v98_v17 = vrot.slane %v97_v16, 2 }
  0xa7   :  { %v99_v19 = vadd.f32 %v98_v17, %v97_v16 }
  0xa9   :  { %v100_v20 = vrot.slane %v99_v19, 1 }
  0xab   :  { %v830_v23 = vadd.f32 %v100_v20, %v99_v19 }
  0xad   :  { %v108_v25 = vmul.f32 %v830_v23, %v51_v21  ;;  %v584_v21 = vld [vmem:[%s877_s2 + $0x2] ss:$0 sm:$0xff] }
  0xaf   :  { %v112_v28 = vrot.slane %v108_v25, %v111_v22 }
  0xb1   :  { %v114_v29 = vadd.f32 %v112_v28, %v107_v27  ;;  %v113_v30 = vadd.f32 %v112_v28, %v106_v26 }
  0xb3   :  { %vm115_vm0 = vcmp.ge.f32.partialorder %v113_v30, 0.0  ;;  %v117_v32 = vmul.f32 0.2, %v113_v30  ;;  %v118_v33 = vmul.f32 0.2, %v114_v29  ;;  %vm116_vm1 = vcmp.ge.f32.partialorder %v114_v29, 0.0 }
  0xb5   :  { %v119_v34 = vsel %vm115_vm0, %v113_v30, %v117_v32  ;;  %v120_v37 = vsel %vm116_vm1, %v114_v29, %v118_v33 }
  0xb6   :  { %v121_v35 = vadd.f32 %v119_v34, %v836_v31  ;;  %v122_v38 = vadd.f32 %v120_v37, %v839_v36 }
  0xb8   :  { %123 = vmax.xlane.f32.xlu1 %v121_v35 }
  0xbc   :  { %125 = vmax.xlane.f32.xlu1 %v122_v38 }
 0x141   :  { %v124_v51 = vpop.xlane.xlu1 %123 }
 0x142   :  { %v127_v52 = vsub.f32 %v121_v35, %v124_v51  ;;  %v781_v35 = vmov 9  }
 0x144   :  { %v129_v53 = vmul.f32 1.442695, %v127_v52 }
 0x145   :  { %v126_v54 = vpop.xlane.xlu1 %125 }
 0x146   :  { %715 = vpow2.f32 %v129_v53  ;;  %v128_v55 = vsub.f32 %v122_v38, %v126_v54 }
 0x148   :  { %v131_v56 = vmul.f32 1.442695, %v128_v55 }
 0x14a   :  { %717 = vpow2.f32 %v131_v56 }
 0x153   :  { %v716_v57 = vpop.eup %715 }
 0x154   :  { %v133_v58 = vmul.f32 %v716_v57, %v830_v23 }
 0x156   :  { %663 = vmatprep.mubr.f32.mxu0 %v133_v58 }
 0x157   :  { %v718_v59 = vpop.eup %717 }
 0x158   :  { %v134_v60 = vmul.f32 %v718_v59, %v830_v23 }
 0x15a   :  { %664 = vmatmul.mubr.f32.vlgmr.msra.gmra.mxu0 %v134_v60 }
 0x15b   :  { %666 = vmatprep.mubr.f32.mxu0 %v716_v57 }
 0x15e   :  { %667 = vmatmul.mubr.f32.gmra.mxu0 %v718_v59 }
 0x21a   :  { %v665_v6 = vpop.f32.mrf.mxu0 }
 0x21c   :  { %v201_v7 = vpop.f32.mrf.mxu0 }
 0x21e   :  { %v668_v10 = vpop.f32.mrf.mxu0 }
 0x21f   :  { %v221_v11 = vmax.f32 %v668_v10, 1e-30 }
 0x220   :  { %v211_v12 = vpop.f32.mrf.mxu0 }
 0x221   :  { %719 = vrcp.f32 %v221_v11  ;;  %v220_v13 = vmax.f32 %v211_v12, 1e-30 }
 0x223   :  { %721 = vrcp.f32 %v220_v13 }
 0x22e   :  { %v720_v14 = vpop.eup %719 }
 0x22f   :  { %v225_v15 = vmul.f32 %v720_v14, %v221_v11 }
 0x230   :  { %v722_v16 = vpop.eup %721 }
 0x231   :  { %v227_v17 = vsub.f32 2.0, %v225_v15  ;;  %v224_v18 = vmul.f32 %v722_v16, %v220_v13 }
 0x233   :  { %v229_v19 = vmul.f32 %v720_v14, %v227_v17  ;;  %v226_v20 = vsub.f32 2.0, %v224_v18 }
 0x235   :  { %v231_v22 = vmul.f32 %v665_v6, %v229_v19  ;;  %v228_v23 = vmul.f32 %v722_v16, %v226_v20  ;;  %v590_v16 = vld [vmem:[%s877_s2 + $0x4] ss:$0 sm:$0xff] }
 0x237   :  { %v230_v25 = vmul.f32 %v228_v23, %v201_v7  ;;  %v237_v26 = vmul.f32 %v584_v21, %v231_v22  ;;  %v591_v23 = vld [vmem:[%s877_s2 + $0x5] ss:$0 sm:$0xff] }
 0x239   :  { %v236_v27 = vmul.f32 %v584_v21, %v230_v25  ;;  %v243_v28 = vadd.f32 %v585_v24, %v237_v26 }
 0x23b   :  { %v242_v29 = vadd.f32 %v585_v24, %v236_v27  ;;  %v245_v32 = vmax.f32 %v243_v28, 0.0 }
 0x23d   :  { %v244_v30 = vmax.f32 %v242_v29, 0.0 }
 0x23f   :  { %685 = vmatprep.mubr.msk.f32.mxu1 %vm246_vm2, %v244_v30 }
 0x240   :  { %686 = vmatmul.mubr.msk.f32.vlgmr.msra.gmra.mxu1 %vm246_vm2, %v245_v32 }
 0x300   :  { %v687_v33 = vpop.f32.mrf.mxu1 }
 0x301   :  { %335 = vperm.xlu1 %713, %v687_v33   ;;  %688 = vmatprep.subr.mxu1 %v687_v33 }
 0x302   :  { %v319_v34 = vpop.f32.mrf.mxu1  ;;  %689 = vmatpush3.msra.mxu1 %v687_v33 }
 0x303   :  { %330 = vperm.xlu0 %712, %v319_v34   ;;  %690 = vmatprep.subr.mxu1 %v319_v34 }
 0x304   :  { %691 = vmatpush3.msra.mxu1 %v319_v34 }
 0x305   :  { %695 = vmatprep.subr.mxu1 %v782_v4 }
 0x307   :  { %714 = vset.pattern.permute.xlu0 %v781_v35  ;;  %v592_v35 = vld [vmem:[%s877_s2 + $0x6] ss:$0 sm:$0xff] }
 0x308   :  { %351 = vperm.xlu0 %714, %v319_v34  }
 0x30c   :  { %355 = vperm.xlu0 %714, %v687_v33   ;;  %v49_v33 = vld [vmem:[#allocation2 + $0x10] sm:$0x3] }
 0x37c   :  { %v336_v37 = vpop.permute.xlu1 %335 }
 0x37d   :  { %v339_v38 = vmul.f32 %v336_v37, %v823_v9 }
 0x37e   :  { %v331_v39 = vpop.permute.xlu0 %330 }
 0x37f   :  { %v338_v40 = vmul.f32 %v331_v39, %v821_v8  ;;  %v342_v41 = vsel %vm340_vm3, %v339_v38, 0.0 }
 0x381   :  { %v341_v42 = vsel %vm340_vm3, %v338_v40, 0.0 }
 0x382   :  { %v343_v43 = vadd.f32 %v342_v41, %v341_v42 }
 0x383   :  { %v352_v47 = vpop.permute.xlu0 %351 }
 0x384   :  { %v344_v44 = vrot.slane %v343_v43, 4 }
 0x386   :  { %v345_v45 = vadd.f32 %v344_v44, %v343_v43 }
 0x387   :  { %v356_v51 = vpop.permute.xlu0 %355 }
 0x388   :  { %v346_v46 = vrot.slane %v345_v45, 2 }
 0x38a   :  { %v347_v48 = vadd.f32 %v346_v46, %v345_v45 }
 0x38c   :  { %v348_v49 = vrot.slane %v347_v48, 1 }
 0x38e   :  { %v349_v50 = vadd.f32 %v348_v49, %v347_v48 }
 0x390   :  { %v358_v52 = vadd.f32 %v352_v47, %v349_v50  ;;  %v359_v53 = vadd.f32 %v356_v51, %v349_v50 }
 0x392   :  { %vm360_vm4 = vcmp.ge.f32.partialorder %v358_v52, 0.0  ;;  %v362_v9 = vmul.f32 0.2, %v358_v52  ;;  %vm361_vm5 = vcmp.ge.f32.partialorder %v359_v53, 0.0  ;;  %v363_v54 = vmul.f32 0.2, %v359_v53 }
 0x394   :  { %v364_v8 = vsel %vm360_vm4, %v358_v52, %v362_v9  ;;  %v365_v55 = vsel %vm361_vm5, %v359_v53, %v363_v54 }
 0x395   :  { %v366_v56 = vadd.f32 %v364_v8, %v836_v31  ;;  %v367_v57 = vadd.f32 %v365_v55, %v839_v36 }
 0x397   :  { %v368_v58 = vsel %vm340_vm3, %v366_v56, -inf  ;;  %v371_v59 = vsel %vm340_vm3, %v367_v57, -inf }
 0x398   :  { %369 = vmax.xlane.f32.xlu1 %v368_v58  ;;  %372 = vmax.xlane.f32.xlu0 %v371_v59 }
 0x421   :  { %v370_v60 = vpop.xlane.xlu1 %369  ;;  %v373_v61 = vpop.xlane.xlu0 %372 }
 0x422   :  { %v374_v62 = vsub.f32 %v366_v56, %v370_v60  ;;  %v375_v63 = vsub.f32 %v367_v57, %v373_v61 }
 0x424   :  { %v376_v0 = vmul.f32 1.442695, %v374_v62  ;;  %v378_v1 = vmul.f32 1.442695, %v375_v63 }
 0x426   :  { %723 = vpow2.f32 %v376_v0 }
 0x427   :  { %725 = vpow2.f32 %v378_v1 }
 0x433   :  { %v724_v2 = vpop.eup %723 }
 0x434   :  { %v726_v3 = vpop.eup %725  ;;  %692 = vmatprep.mubr.msk.f32.mxu1 %vm340_vm3, %v724_v2  ;;  %v461_v31 = vsel %vm340_vm3, %v724_v2, 0.0 }
 0x435   :  { %462 = vadd.xlane.f32.xlu1 %v461_v31  ;;  %v464_v36 = vsel %vm340_vm3, %v726_v3, 0.0  ;;  %693 = vmatmul.mubr.msk.f32.vlgmr.msra.gmra.mxu1 %vm340_vm3, %v726_v3 }
 0x436   :  { %465 = vadd.xlane.f32.xlu0 %v464_v36  ;;  %699 = vmatprep.mubr.msk.f32.mxu1 %vm783_vm7, %v782_v4 }
 0x4be   :  { %v463_v6 = vpop.xlane.xlu1 %462 }
 0x4bf   :  { %v466_v5 = vpop.xlane.xlu0 %465 }
 0x4c0   :  { %727 = vrcp.f32 %v466_v5 }
 0x4c1   :  { %729 = vrcp.f32 %v463_v6 }
 0x4cd   :  { %v728_v7 = vpop.eup %727 }
 0x4ce   :  { %v730_v10 = vpop.eup %729  ;;  %v470_v11 = vmul.f32 %v728_v7, %v466_v5 }
 0x4cf   :  { %v469_v12 = vmul.f32 %v730_v10, %v463_v6 }
 0x4d0   :  { %v472_v13 = vsub.f32 2.0, %v470_v11 }
 0x4d1   :  { %v471_v14 = vsub.f32 2.0, %v469_v12 }
 0x4d2   :  { %v474_v15 = vmul.f32 %v728_v7, %v472_v13 }
 0x4d3   :  { %v473_v19 = vmul.f32 %v730_v10, %v471_v14 }
 0x4f5   :  { %v694_v17 = vpop.f32.mrf.mxu1 }
 0x4f6   :  { %v476_v18 = vmul.f32 %v694_v17, %v474_v15 }
 0x4f7   :  { %v452_v20 = vpop.f32.mrf.mxu1 }
 0x4f8   :  { %v482_v21 = vadd.f32 %v590_v16, %v476_v18  ;;  %v475_v22 = vmul.f32 %v473_v19, %v452_v20 }
 0x4fa   :  { %v484_v24 = vmax.f32 %v482_v21, 0.0  ;;  %v481_v25 = vadd.f32 %v590_v16, %v475_v22 }
 0x4fc   :  { %v483_v26 = vmax.f32 %v481_v25, 0.0  ;;  %v490_v27 = vmul.f32 %v591_v23, %v484_v24 }
 0x4fe   :  { %v495_v28 = vsel %vm491_vm6, %v490_v27, 0.0  ;;  %v489_v29 = vmul.f32 %v591_v23, %v483_v26 }
 0x4ff   :  { %496 = vadd.xlane.f32.xlu0 %v495_v28 }
 0x500   :  { %v492_v30 = vsel %vm491_vm6, %v489_v29, 0.0 }
 0x501   :  { %493 = vadd.xlane.f32.xlu1 %v492_v30 }
 0x588   :  { %v497_v32 = vpop.xlane.xlu0 %496 }
 0x589   :  { %696 = vmatpush3.msra.mxu1 %v497_v32 }
 0x58a   :  { %697 = vmatprep.subr.mxu1 %v782_v4  ;;  %v494_v34 = vpop.xlane.xlu1 %493 }
 0x58b   :  { %698 = vmatpush3.msra.mxu1 %v494_v34 }
 0x58c   :  { %700 = vmatmul.mubr.msk.f32.vlgmr.msra.gmra.mxu1 %vm340_vm3, %v49_v33 }
 0x64c   :  { %v571_v37 = vpop.f32.mrf.mxu1 }
 0x64d   :  { %v572_v38 = vadd.f32 %v592_v35, %v571_v37 }
 0x64e   :  { %v701_v39 = vpop.f32.mrf.mxu1 }
 0x64f   :  { %576 = vst.msk [vmem:[%s879_s4] sm:$0x3] %vm575_vm8, %v572_v38 }
 0x650   :  { %581 = vsyncpa [#allocation3], 1 }
 0x651   :  { %582 = vsyncpa [#allocation5], 1 }

</bundles_post_ra>
